<compile_context>
chip_gen: v5e
topology: v5e:2x2
jax: 0.10.0
libtpu: 0.0.40
codegen_flags: <defaults>
</compile_context>

<pallas_src>
import functools

import jax
import jax.numpy as jnp
from jax.experimental import pallas as pl
from jax.experimental.pallas import tpu as pltpu

_SMOOTH = 1.0


def _round_up(x, m):
    return (x + m - 1) // m * m


def _sublane_pack(itemsize):
    # rows per (sublane-packed) vreg group: 8 (f32), 16 (bf16), 32 (int8/bool)
    return max(8, 32 // max(1, itemsize))


def _vmem_capacity_bytes():
    try:
        info = pltpu.get_tpu_info()
        cap = getattr(info, "vmem_capacity_bytes", None)
        if cap:
            return int(cap)
    except Exception:
        pass
    return 64 * 1024 * 1024  # conservative fallback (v7x-sized)


def _choose_tile_lanes(rows, f2, logits_itemsize, targets_itemsize, vmem_cap):
    """Largest lane tile whose double-buffered inputs + the two f32
    accumulators fit well inside this generation's scoped-VMEM budget."""
    budget = (vmem_cap * 3) // 8          # ~24 MiB on v7x, ~48 MiB on v5e/v6e
    rows_l = _round_up(rows, _sublane_pack(logits_itemsize))
    rows_t = _round_up(rows, _sublane_pack(targets_itemsize))
    rows_a = _round_up(rows, 8)
    per_lane = (2 * rows_l * logits_itemsize      # logits, double-buffered
                + 2 * rows_t * targets_itemsize   # targets, double-buffered
                + 2 * rows_a * 4)                 # two f32 accumulators
    tile = max(128, (budget // per_lane) // 128 * 128)
    if tile >= f2:
        return f2                                 # single full-width block
    return tile


def _soft_dice_kernel(logits_ref, targets_ref, inter_out_ref, s12_out_ref,
                      inter_acc, s12_acc, *, rows, tile_lanes, f2,
                      tiles_per_split, needs_mask, full_tiles):
    s = pl.program_id(0)   # parallel split of the F reduction (v7x megacore)
    k = pl.program_id(1)   # reduction steps within a split

    # Zero the tile-shaped accumulators at the start of each split.
    @pl.when(k == 0)
    def _init():
        inter_acc[...] = jnp.zeros_like(inter_acc)
        s12_acc[...] = jnp.zeros_like(s12_acc)

    probs = jax.nn.sigmoid(logits_ref[...].astype(jnp.float32))   # EUP + VPU
    t = targets_ref[...].astype(jnp.float32)

    def accumulate(p, tt):
        # Pure VPU adds into tile-shaped f32 scratch; no per-step XLU reduce.
        inter_acc[...] += p * tt
        s12_acc[...] += p + tt

    if needs_mask:
        # Only the tiles at/after the last fully-populated one need masking;
        # every other step runs the fast unmasked path.
        g = s * tiles_per_split + k              # global lane-tile index
        is_full = g < full_tiles

        @pl.when(is_full)
        def _fast():
            accumulate(probs, t)

        @pl.when(jnp.logical_not(is_full))
        def _tail():
            lane = jax.lax.broadcasted_iota(jnp.int32, (rows, tile_lanes), 1)
            valid = (g * tile_lanes + lane) < f2
            accumulate(jnp.where(valid, probs, 0.0), jnp.where(valid, t, 0.0))
    else:
        accumulate(probs, t)

    # Single cross-lane reduce per split; per-sample combination + dice score
    # happen in the (tiny) wrapper epilogue.
    @pl.when(k == tiles_per_split - 1)
    def _finalize():
        inter_out_ref[0] = jnp.sum(inter_acc[...], axis=1, keepdims=True)
        s12_out_ref[0] = jnp.sum(s12_acc[...], axis=1, keepdims=True)


def soft_dice_loss(logits, targets, *, tile_lanes=None):
    """Pallas implementation of SoftDiceLoss.forward (returns scalar f32)."""
    n = logits.shape[0]
    logits2d = logits.reshape(n, -1)            # native dtype, free reshape
    targets2d = targets.reshape(n, -1)          # native dtype (f32/bf16/int8/bool)
    f = logits2d.shape[1]

    # Fold rows to fill sublanes: (N, F) -> (N*R, F/R), R = largest power of 2
    # dividing F (up to the sublane pack of the logits dtype).  Free reshape.
    pack = _sublane_pack(logits2d.dtype.itemsize)
    r = 1
    while r < pack and f % (r * 2) == 0:
        r *= 2
    rows = n * r
    f2 = f // r
    x = logits2d.reshape(rows, f2)
    tg = targets2d.reshape(rows, f2)

    vmem_cap = _vmem_capacity_bytes()
    if tile_lanes is None:
        tile_lanes = _choose_tile_lanes(rows, f2, x.dtype.itemsize,
                                        tg.dtype.itemsize, vmem_cap)
    if tile_lanes >= f2:
        tile_lanes = f2
    else:
        tile_lanes = max(128, (tile_lanes // 128) * 128)
        if tile_lanes >= f2:
            tile_lanes = f2

    tiles_total = -(-f2 // tile_lanes)
    # 2-way split of the reduction axis for v7x's two TensorCores; only when it
    # divides the tile count evenly (keeps index maps trivially in range).
    # Near-zero cost on 1-TC chips (v5e/v6e).
    n_split = 2 if (tiles_total >= 2 and tiles_total % 2 == 0) else 1
    tiles_per_split = tiles_total // n_split
    needs_mask = (n_split * tiles_per_split * tile_lanes) != f2
    full_tiles = f2 // tile_lanes

    kernel = functools.partial(
        _soft_dice_kernel, rows=rows, tile_lanes=tile_lanes, f2=f2,
        tiles_per_split=tiles_per_split, needs_mask=needs_mask,
        full_tiles=full_tiles)

    in_idx = lambda s, k: (0, s * tiles_per_split + k)
    out_idx = lambda s, k: (s, 0, 0)

    inter_part, s12_part = pl.pallas_call(
        kernel,
        out_shape=(
            jax.ShapeDtypeStruct((n_split, rows, 1), jnp.float32),
            jax.ShapeDtypeStruct((n_split, rows, 1), jnp.float32),
        ),
        grid_spec=pltpu.PrefetchScalarGridSpec(
            num_scalar_prefetch=0,
            grid=(n_split, tiles_per_split),
            in_specs=[
                pl.BlockSpec((rows, tile_lanes), in_idx),
                pl.BlockSpec((rows, tile_lanes), in_idx),
            ],
            out_specs=(
                pl.BlockSpec((1, rows, 1), out_idx),
                pl.BlockSpec((1, rows, 1), out_idx),
            ),
            scratch_shapes=[
                pltpu.VMEM((rows, tile_lanes), jnp.float32),  # intersection acc
                pltpu.VMEM((rows, tile_lanes), jnp.float32),  # sum(p)+sum(t) acc
            ],
        ),
        compiler_params=pltpu.CompilerParams(
            dimension_semantics=("parallel", "arbitrary"),
            # ~48 MiB on v7x (64 MiB phys), ~96 MiB on v5e/v6e (128 MiB phys).
            vmem_limit_bytes=max(32 * 1024 * 1024,
                                 min((vmem_cap * 3) // 4, 96 * 1024 * 1024)),
        ),
    )(x, tg)

    # Tiny O(N) dice epilogue: combine split partials, undo the row fold.
    inter = inter_part.sum(axis=0)[:, 0].reshape(n, r).sum(axis=1)
    s12 = s12_part.sum(axis=0)[:, 0].reshape(n, r).sum(axis=1)
    score = 2.0 * (inter + _SMOOTH) / (s12 + _SMOOTH)
    return 1.0 - jnp.sum(score) / n


def _reference(logits, targets):
    num = logits.shape[0]
    probs = jax.nn.sigmoid(logits.astype(jnp.float32))
    m1 = probs.reshape(num, -1)
    m2 = targets.astype(jnp.float32).reshape(num, -1)
    inter = (m1 * m2).sum(axis=1)
    score = 2.0 * (inter + _SMOOTH) / (m1.sum(axis=1) + m2.sum(axis=1) + _SMOOTH)
    return 1.0 - score.sum() / num


if __name__ == "__main__":
    key = jax.random.PRNGKey(0)
    k1, k2, k3, k4 = jax.random.split(key, 4)

    # Primary case: N=2, C=4, H=W=16 -> F=1024 (row fold fills all 8 sublanes).
    logits = jax.random.normal(k1, (2, 4, 16, 16), dtype=jnp.float32)
    targets = (jax.random.uniform(k2, (2, 4, 16, 16)) > 0.5).astype(jnp.float32)
    loss = jax.block_until_ready(soft_dice_loss(logits, targets))
    ref = jax.block_until_ready(_reference(logits, targets))
    assert jnp.allclose(loss, ref, atol=1e-5, rtol=1e-5), (loss, ref)

    # Ragged / multi-tile case: F=969 (odd), forced small tile to exercise the
    # in-kernel tail mask and the 2-way parallel split of the reduction axis.
    logits2 = jax.random.normal(k3, (2, 3, 17, 19), dtype=jnp.float32)
    targets2 = (jax.random.uniform(k4, (2, 3, 17, 19)) > 0.5).astype(jnp.float32)
    loss2 = jax.block_until_ready(soft_dice_loss(logits2, targets2, tile_lanes=256))
    ref2 = jax.block_until_ready(_reference(logits2, targets2))
    assert jnp.allclose(loss2, ref2, atol=1e-5, rtol=1e-5), (loss2, ref2)

    print("KERNEL_OK")
</pallas_src>

<mosaic_0001>
module attributes {stable_mosaic.version = 11 : i64} {
  func.func @_soft_dice_kernel(%arg0: i32, %arg1: i32, %arg2: memref<16x128xf32, #tpu.memory_space<vmem>>, %arg3: memref<16x128xf32, #tpu.memory_space<vmem>>, %arg4: memref<1x16x1xf32, #tpu.memory_space<vmem>>, %arg5: memref<1x16x1xf32, #tpu.memory_space<vmem>>, %arg6: memref<16x128xf32, #tpu.memory_space<vmem>>, %arg7: memref<16x128xf32, #tpu.memory_space<vmem>>) attributes {dimension_semantics = [#tpu.dimension_semantics<parallel>, #tpu.dimension_semantics<arbitrary>], iteration_bounds = array<i64: 1, 1>, scalar_prefetch = 0 : i64, scratch_operands = 2 : i64, tpu.core_type = #tpu.core_type<tc>, window_params = [{transform_indices = @transform_0, window_bounds = array<i64: 16, 128>}, {transform_indices = @transform_1, window_bounds = array<i64: 16, 128>}, {transform_indices = @transform_2, window_bounds = array<i64: 1, 16, 1>}, {transform_indices = @transform_3, window_bounds = array<i64: 1, 16, 1>}]} {
    %c0_i32 = arith.constant 0 : i32
    %0 = arith.cmpi eq, %arg1, %c0_i32 : i32
    %1 = arith.extui %0 : i1 to i32
    %c0_i32_0 = arith.constant 0 : i32
    %2 = arith.cmpi ne, %1, %c0_i32_0 : i32
    scf.if %2 {
      %cst_14 = arith.constant 0.000000e+00 : f32
      %21 = vector.broadcast %cst_14 : f32 to vector<16x128xf32>
      %c0_15 = arith.constant 0 : index
      %c0_16 = arith.constant 0 : index
      %22 = vector.load %arg6[%c0_15, %c0_16] : memref<16x128xf32, #tpu.memory_space<vmem>>, vector<16x128xf32>
      tpu.vector_store %arg6[%c0_15, %c0_16], %21 {strides = array<i32>} : memref<16x128xf32, #tpu.memory_space<vmem>>, vector<16x128xf32>,
      %cst_17 = arith.constant 0.000000e+00 : f32
      %23 = vector.broadcast %cst_17 : f32 to vector<16x128xf32>
      %c0_18 = arith.constant 0 : index
      %c0_19 = arith.constant 0 : index
      %24 = vector.load %arg7[%c0_18, %c0_19] : memref<16x128xf32, #tpu.memory_space<vmem>>, vector<16x128xf32>
      tpu.vector_store %arg7[%c0_18, %c0_19], %23 {strides = array<i32>} : memref<16x128xf32, #tpu.memory_space<vmem>>, vector<16x128xf32>,
    } else {
    }
    %c0 = arith.constant 0 : index
    %c0_1 = arith.constant 0 : index
    %3 = vector.load %arg2[%c0, %c0_1] : memref<16x128xf32, #tpu.memory_space<vmem>>, vector<16x128xf32>
    %4 = arith.negf %3 : vector<16x128xf32>
    %5 = math.exp %4 : vector<16x128xf32>
    %cst = arith.constant 1.000000e+00 : f32
    %6 = vector.broadcast %cst : f32 to vector<16x128xf32>
    %7 = arith.addf %6, %5 : vector<16x128xf32>
    %8 = arith.divf %6, %7 : vector<16x128xf32>
    %c0_2 = arith.constant 0 : index
    %c0_3 = arith.constant 0 : index
    %9 = vector.load %arg3[%c0_2, %c0_3] : memref<16x128xf32, #tpu.memory_space<vmem>>, vector<16x128xf32>
    %c0_4 = arith.constant 0 : index
    %c0_5 = arith.constant 0 : index
    %10 = vector.load %arg6[%c0_4, %c0_5] : memref<16x128xf32, #tpu.memory_space<vmem>>, vector<16x128xf32>
    %11 = arith.mulf %8, %9 : vector<16x128xf32>
    %12 = arith.addf %10, %11 : vector<16x128xf32>
    %c0_6 = arith.constant 0 : index
    %c0_7 = arith.constant 0 : index
    %13 = vector.load %arg6[%c0_6, %c0_7] : memref<16x128xf32, #tpu.memory_space<vmem>>, vector<16x128xf32>
    tpu.vector_store %arg6[%c0_6, %c0_7], %12 {strides = array<i32>} : memref<16x128xf32, #tpu.memory_space<vmem>>, vector<16x128xf32>,
    %c0_8 = arith.constant 0 : index
    %c0_9 = arith.constant 0 : index
    %14 = vector.load %arg7[%c0_8, %c0_9] : memref<16x128xf32, #tpu.memory_space<vmem>>, vector<16x128xf32>
    %15 = arith.addf %8, %9 : vector<16x128xf32>
    %16 = arith.addf %14, %15 : vector<16x128xf32>
    %c0_10 = arith.constant 0 : index
    %c0_11 = arith.constant 0 : index
    %17 = vector.load %arg7[%c0_10, %c0_11] : memref<16x128xf32, #tpu.memory_space<vmem>>, vector<16x128xf32>
    tpu.vector_store %arg7[%c0_10, %c0_11], %16 {strides = array<i32>} : memref<16x128xf32, #tpu.memory_space<vmem>>, vector<16x128xf32>,
    %c0_i32_12 = arith.constant 0 : i32
    %18 = arith.cmpi eq, %arg1, %c0_i32_12 : i32
    %19 = arith.extui %18 : i1 to i32
    %c0_i32_13 = arith.constant 0 : i32
    %20 = arith.cmpi ne, %19, %c0_i32_13 : i32
    scf.if %20 {
      %c0_14 = arith.constant 0 : index
      %c0_15 = arith.constant 0 : index
      %21 = vector.load %arg6[%c0_14, %c0_15] : memref<16x128xf32, #tpu.memory_space<vmem>>, vector<16x128xf32>
      %cst_16 = arith.constant dense<0.000000e+00> : vector<16xf32>
      %22 = vector.multi_reduction <add>, %21, %cst_16 [1] : vector<16x128xf32> to vector<16xf32>
      %23 = vector.shape_cast %22 : vector<16xf32> to vector<16x1xf32>
      %c0_17 = arith.constant 0 : index
      %c0_18 = arith.constant 0 : index
      %c0_19 = arith.constant 0 : index
      %24 = vector.load %arg4[%c0_17, %c0_18, %c0_19] : memref<1x16x1xf32, #tpu.memory_space<vmem>>, vector<1x16x1xf32>
      %25 = vector.shape_cast %24 : vector<1x16x1xf32> to vector<16x1xf32>
      %26 = vector.shape_cast %23 : vector<16x1xf32> to vector<1x16x1xf32>
      tpu.vector_store %arg4[%c0_17, %c0_18, %c0_19], %26 {strides = array<i32>} : memref<1x16x1xf32, #tpu.memory_space<vmem>>, vector<1x16x1xf32>,
      %c0_20 = arith.constant 0 : index
      %c0_21 = arith.constant 0 : index
      %27 = vector.load %arg7[%c0_20, %c0_21] : memref<16x128xf32, #tpu.memory_space<vmem>>, vector<16x128xf32>
      %cst_22 = arith.constant dense<0.000000e+00> : vector<16xf32>
      %28 = vector.multi_reduction <add>, %27, %cst_22 [1] : vector<16x128xf32> to vector<16xf32>
      %29 = vector.shape_cast %28 : vector<16xf32> to vector<16x1xf32>
      %c0_23 = arith.constant 0 : index
      %c0_24 = arith.constant 0 : index
      %c0_25 = arith.constant 0 : index
      %30 = vector.load %arg5[%c0_23, %c0_24, %c0_25] : memref<1x16x1xf32, #tpu.memory_space<vmem>>, vector<1x16x1xf32>
      %31 = vector.shape_cast %30 : vector<1x16x1xf32> to vector<16x1xf32>
      %32 = vector.shape_cast %29 : vector<16x1xf32> to vector<1x16x1xf32>
      tpu.vector_store %arg5[%c0_23, %c0_24, %c0_25], %32 {strides = array<i32>} : memref<1x16x1xf32, #tpu.memory_space<vmem>>, vector<1x16x1xf32>,
    } else {
    }
    return
  }
  func.func @transform_0(%arg0: i32, %arg1: i32) -> (i32, i32) {
    %c1_i32 = arith.constant 1 : i32
    %0 = arith.muli %arg0, %c1_i32 : i32
    %1 = arith.addi %0, %arg1 : i32
    %c0_i32 = arith.constant 0 : i32
    %c0_i32_0 = arith.constant 0 : i32
    return %c0_i32, %1 : i32, i32
  }
  func.func @transform_1(%arg0: i32, %arg1: i32) -> (i32, i32) {
    %c1_i32 = arith.constant 1 : i32
    %0 = arith.muli %arg0, %c1_i32 : i32
    %1 = arith.addi %0, %arg1 : i32
    %c0_i32 = arith.constant 0 : i32
    %c0_i32_0 = arith.constant 0 : i32
    return %c0_i32, %1 : i32, i32
  }
  func.func @transform_2(%arg0: i32, %arg1: i32) -> (i32, i32, i32) {
    %c0_i32 = arith.constant 0 : i32
    %c0_i32_0 = arith.constant 0 : i32
    %c0_i32_1 = arith.constant 0 : i32
    return %arg0, %c0_i32, %c0_i32_0 : i32, i32, i32
  }
  func.func @transform_3(%arg0: i32, %arg1: i32) -> (i32, i32, i32) {
    %c0_i32 = arith.constant 0 : i32
    %c0_i32_0 = arith.constant 0 : i32
    %c0_i32_1 = arith.constant 0 : i32
    return %arg0, %c0_i32, %c0_i32_0 : i32, i32, i32
  }
}

</mosaic_0001>

<bundles_post_ra>
// kernel: tpu_custom_call.1
= control target key start
LH: loop header
LB: loop body
LE: loop exit
PB: predicated region body
PF: predicated region fallthrough
CT: control target
= control target key end

     0   :  { %9 = vsyncpa [#allocation5], 0  ;;  %s257_s0 = inlined_call_operand.hbm [shape: f32[16,128], index: 0, kind: input, shape index: {}]   ;;  %s258_s1 = inlined_call_operand.hbm [shape: f32[16,128], index: 1, kind: input, shape index: {}]   ;;  %s259_s2 = inlined_call_operand.vmem [shape: f32[1,16,1], index: 2, kind: output, shape index: {0}]   ;;  %s260_s3 = inlined_call_operand.vmem [shape: f32[1,16,1], index: 3, kind: output, shape index: {1}]  }
   0x1   :  { %s18_s14 = sshll.u32 %s257_s0, 4  ;;  %s19_s14 = int_to_ptr.hbm [resolvable:$true] %s18_s14 }
   0x2   :  { %10 = vsyncpa [#allocation7], 0  ;;  %s215_s15 = smov [#allocation4]   ;;  %s34_s19 = sshll.u32 %s258_s1, 4  ;;  %s35_s19 = int_to_ptr.hbm [resolvable:$true] %s34_s19 }
   0x3   :  { %s20_s16 = sshll.u32 %s215_s15, 4  ;;  %s216_s20 = smov 128   ;;  %s21_s16 = int_to_ptr.vmem [resolvable:$true] %s20_s16 }
   0x4   :  { %s217_s21 = smov 8   ;;  %s218_s22 = smov [#allocation6]  }
   0x5   :  { %26 = dma.hbm_to_vmem [thread:$0]  %s19_s14, 256, %s21_s16, [#allocation5], %s216_s20, %s216_s20, %s217_s21  }
   0x6   :  { %s36_s23 = sshll.u32 %s218_s22, 4  ;;  %s37_s23 = int_to_ptr.vmem [resolvable:$true] %s36_s23 }
   0x7   :  { %42 = dma.hbm_to_vmem [thread:$0]  %s35_s19, 256, %s37_s23, [#allocation7], %s216_s20, %s216_s20, %s217_s21  }
   0x8   :  { %211 = dma.done.wait [#allocation5], 256  }
   0x9   :  { %212 = vsyncadd [#allocation5], 4294967040 }
   0xa   :  { %213 = dma.done.wait [#allocation7], 256  }
   0xb   :  { %214 = vsyncadd [#allocation7], 4294967040  ;;  %v61_v0 = vld [vmem:[#allocation4] sm:$0xff]  ;;  %v62_v1 = vld [vmem:[#allocation4 + $0x8] sm:$0xff]  ;;  %vm128_vm8 = vcmask 7168  }
   0xc   :  { %v149_v2 = vmul.f32 -1.442695, %v61_v0  ;;  %v150_v3 = vmul.f32 -1.442695, %v62_v1  ;;  %v101_v22 = vld [vmem:[#allocation6] sm:$0xff]  ;;  %v102_v31 = vld [vmem:[#allocation6 + $0x8] sm:$0xff] }
   0xe   :  { %155 = vpow2.f32 %v149_v2 }
   0xf   :  { %157 = vpow2.f32 %v150_v3 }
  0x14   :  { %v156_v4 = vpop.eup %155 }
  0x15   :  { %v158_v5 = vpop.eup %157  ;;  %v69_v6 = vadd.f32 1.0, %v156_v4 }
  0x16   :  { %v70_v7 = vadd.f32 1.0, %v158_v5 }
  0x17   :  { %159 = vrcp.f32 %v69_v6  ;;  %v82_v11 = vand.u32 2147483648, %v69_v6  ;;  %vm76_vm0 = vweird.f32 %v69_v6  ;;  %v80_v14 = vand.u32 2147483647, %v69_v6 }
  0x18   :  { %161 = vrcp.f32 %v70_v7  ;;  %vm91_vm2 = vweird.f32 %v70_v7  ;;  %v97_v19 = vand.u32 2147483648, %v70_v7  ;;  %v95_v21 = vand.u32 2147483647, %v70_v7 }
  0x19   :  { %v83_v17 = vor.u32 1.1754944e-38, %v82_v11  ;;  %vm81_vm5 = vcmp.eq.f32.partialorder %v80_v14, 8.507059e+37 }
  0x1a   :  { %v98_v26 = vor.u32 1.1754944e-38, %v97_v19  ;;  %vm96_vm7 = vcmp.eq.f32.partialorder %v95_v21, 8.507059e+37 }
  0x1d   :  { %v160_v8 = vpop.eup %159 }
  0x1e   :  { %v162_v9 = vpop.eup %161  ;;  %v72_v10 = vmul.f32 %v160_v8, %v69_v6  ;;  %vm77_vm1 = vweird.f32 %v160_v8 }
  0x1f   :  { %v87_v12 = vmul.f32 %v162_v9, %v70_v7  ;;  %vm92_vm3 = vweird.f32 %v162_v9  ;;  %vm78_vm4 = vmor %vm76_vm0, %vm77_vm1 }
  0x20   :  { %v73_v13 = vsub.f32 1.0, %v72_v10  ;;  %vm93_vm6 = vmor %vm91_vm2, %vm92_vm3 }
  0x21   :  { %v88_v15 = vsub.f32 1.0, %v87_v12 }
  0x22   :  { %v74_v16 = vmul.f32 %v160_v8, %v73_v13 }
  0x23   :  { %v89_v18 = vmul.f32 %v162_v9, %v88_v15 }
  0x24   :  { %v75_v20 = vadd.f32 %v160_v8, %v74_v16 }
  0x25   :  { %v90_v23 = vadd.f32 %v162_v9, %v89_v18 }
  0x26   :  { %v79_v24 = vsel %vm78_vm4, %v160_v8, %v75_v20 }
  0x27   :  { %v84_v25 = vsel %vm81_vm5, %v83_v17, %v79_v24  ;;  %v94_v29 = vsel %vm93_vm6, %v162_v9, %v90_v23 }
  0x28   :  { %v113_v27 = vadd.f32 %v101_v22, %v84_v25  ;;  %v105_v28 = vmul.f32 %v101_v22, %v84_v25  ;;  %v99_v30 = vsel %vm96_vm7, %v98_v26, %v94_v29 }
  0x29   :  { %v114_v32 = vadd.f32 %v102_v31, %v99_v30  ;;  %v106_v33 = vmul.f32 %v102_v31, %v99_v30 }
  0x2a   :  { %133 = vadd.xlane.f32.xlu1 %v113_v27  ;;  %124 = vadd.xlane.f32.xlu0 %v105_v28 }
  0x32   :  { %135 = vadd.xlane.f32.xlu1 %v114_v32  ;;  %126 = vadd.xlane.f32.xlu0 %v106_v33 }
  0x9d   :  { %v134_v34 = vpop.xlane.xlu1 %133  ;;  %v125_v35 = vpop.xlane.xlu0 %124 }
  0x9e   :  { %137 = vst.msk [vmem:[%s260_s3] sm:$0xff] %vm128_vm8, %v134_v34 }
  0x9f   :  { %129 = vst.msk [vmem:[%s259_s2] sm:$0xff] %vm128_vm8, %v125_v35 }
  0xa5   :  { %v136_v36 = vpop.xlane.xlu1 %135  ;;  %v127_v37 = vpop.xlane.xlu0 %126 }
  0xa6   :  { %138 = vst.msk [vmem:[%s260_s3 + $0x8] sm:$0xff] %vm128_vm8, %v136_v36 }
  0xa7   :  { %130 = vst.msk [vmem:[%s259_s2 + $0x8] sm:$0xff] %vm128_vm8, %v127_v37 }
  0xa8   :  { %147 = vsyncpa [#allocation5], 1 }
  0xa9   :  { %148 = vsyncpa [#allocation7], 1 }

</bundles_post_ra>
